<compile_context>
chip_gen: v5e
topology: v5e:2x2
jax: 0.10.0
libtpu: 0.0.40
codegen_flags: <defaults>
</compile_context>

<pallas_src>
import functools

import jax
import jax.numpy as jnp
from jax.experimental import pallas as pl
from jax.experimental.pallas import tpu as pltpu


def _round_up(x, m):
    return ((x + m - 1) // m) * m


def _num_tensorcores_per_chip():
    """2 TensorCores per chip on v7x, 1 on v5e/v6e. Conservative fallback: 1."""
    try:
        kind = jax.local_devices()[0].device_kind.lower()
    except Exception:
        return 1
    if "v7" in kind or "7x" in kind:
        return 2
    return 1


def _attention_kernel(img_ref, qb_ref, w1i_ref, w2_ref, att_ref, s_acc,
                      *, valid_l):
    # Grid: (batch_block i [parallel], hidden_tile h [arbitrary, innermost]).
    # img_ref:  (1, B_blk, L_pad, D_img)  resident across the h axis
    # qb_ref:   (1, B_blk, H_tile)        q @ W1_txt + b1, current H tile
    # w1i_ref:  (D_img, H_tile)           W1 slice acting on image features
    # w2_ref:   (1, H_tile)               lc weight, lane-dense row, current tile
    # att_ref:  (1, B_blk, L_pad)         softmax weights (written at last h)
    # s_acc:    (B_blk, L_pad) f32        logit accumulator across H tiles
    h_idx = pl.program_id(1)

    @pl.when(h_idx == 0)
    def _():
        s_acc[...] = jnp.zeros_like(s_acc)

    img = img_ref[0]                                     # (B_blk, L_pad, D_img)
    qb = qb_ref[0].astype(jnp.float32)                   # (B_blk, H_tile)
    w2_row = w2_ref[...].astype(jnp.float32)             # (1, H_tile)

    # Fa (image part of this H tile): one fat MXU contraction over D_img,
    # producing (B_blk, L_pad, H_tile) directly — no in-kernel reshapes.
    h = jax.lax.dot_general(
        img, w1i_ref[...],
        dimension_numbers=(((2,), (0,)), ((), ())),
        preferred_element_type=jnp.float32)              # (B_blk, L_pad, H_tile)
    # ReLU is elementwise over H, so per-tile ReLU + w2-weighted lane reduce is
    # exactly the untiled computation. b2 omitted: cancels in softmax over L.
    h = jnp.maximum(h + qb[:, None, :], 0.0)
    s_acc[...] += jnp.sum(h * w2_row, axis=-1)           # (B_blk, L_pad)

    @pl.when(h_idx == pl.num_programs(1) - 1)
    def _():
        s = s_acc[...]
        b_blk, l_pad = s.shape
        if l_pad > valid_l:  # static: mask padded locations out of the softmax
            row = jax.lax.broadcasted_iota(jnp.int32, (b_blk, l_pad), 1)
            s = jnp.where(row < valid_l, s, -1e30)
        m = jnp.max(s, axis=-1, keepdims=True)
        e = jnp.exp(s - m)
        denom = jnp.sum(e, axis=-1, keepdims=True)       # (B_blk, 1): exact divide
        att_ref[0] = (e / denom).astype(att_ref.dtype)


def concatenate_attention(image_feat, question_embedding, params,
                          compute_dtype=jnp.bfloat16):
    """image_feat: (B, L, D_img) f32, question_embedding: (B, D_txt) f32."""
    B, L, D_img = image_feat.shape
    w1_img, w1_txt, b1, w2, b2 = params
    H = w1_img.shape[1]
    del b2  # constant over L -> cancels exactly in softmax; never shipped.

    # Hoist the question projection (an M=1 matmul) and b1 out of the kernel.
    q_bias = question_embedding @ w1_txt + b1            # (B, H), f32

    # --- H padding + tiling (lane dim of h/qb/w2, MXU N dim) ---------------
    if H <= 512:
        H_tile = _round_up(H, 128)
        H_pad = H_tile
    else:
        H_tile = 512
        H_pad = _round_up(H, H_tile)
    num_h = H_pad // H_tile
    if H_pad != H:
        # Zero-padded columns give ReLU(0 + 0) * 0 = 0 -> logits unchanged.
        w1_img = jnp.pad(w1_img, ((0, 0), (0, H_pad - H)))
        q_bias = jnp.pad(q_bias, ((0, 0), (0, H_pad - H)))
        w2 = jnp.pad(w2, ((0, H_pad - H), (0, 0)))

    # --- L padding (sublane multiple); padded logits are masked in-kernel ---
    L_pad = _round_up(L, 8)
    if L_pad != L:
        image_feat = jnp.pad(image_feat, ((0, 0), (0, L_pad - L), (0, 0)))

    # --- chip-conditional batch split: only v7x's 2 TensorCores benefit -----
    num_tc = _num_tensorcores_per_chip()
    num_steps = 2 if (num_tc >= 2 and B >= 2 and B % 2 == 0) else 1
    B_blk = B // num_steps

    # --- bf16 MXU path (accumulation stays f32 inside the kernel) -----------
    img4 = image_feat.reshape(num_steps, B_blk, L_pad, D_img).astype(compute_dtype)
    qb3 = q_bias.reshape(num_steps, B_blk, H_pad).astype(compute_dtype)
    w1i = w1_img.astype(compute_dtype)                   # (D_img, H_pad)
    w2_row = w2.reshape(1, H_pad).astype(compute_dtype)  # lane-dense row

    itemsize = jnp.dtype(compute_dtype).itemsize
    vmem_est = (
        2 * B_blk * L_pad * D_img * itemsize             # img block (2 buffers)
        + 2 * B_blk * H_tile * itemsize                  # q_bias tile
        + 2 * D_img * H_tile * itemsize                  # W1 tile (streamed)
        + 2 * H_tile * itemsize                          # w2 tile
        + 2 * B_blk * L_pad * 4                          # output block
        + B_blk * L_pad * 4                              # s accumulator scratch
        + B_blk * L_pad * H_tile * 4                     # h intermediate (f32)
    )
    vmem_limit = int(min(64 * 2**20, max(vmem_est + 4 * 2**20, 8 * 2**20)))

    cost = pl.CostEstimate(
        flops=2 * B * L_pad * D_img * H_pad + 4 * B * L_pad * H_pad,
        transcendentals=B * L_pad,
        bytes_accessed=(img4.size + qb3.size + w2_row.size) * itemsize
        + w1i.size * itemsize * num_steps
        + num_steps * B_blk * L_pad * 4,
    )

    kernel = functools.partial(_attention_kernel, valid_l=L)

    att = pl.pallas_call(
        kernel,
        out_shape=jax.ShapeDtypeStruct((num_steps, B_blk, L_pad), jnp.float32),
        grid_spec=pltpu.PrefetchScalarGridSpec(
            num_scalar_prefetch=0,
            grid=(num_steps, num_h),
            in_specs=[
                pl.BlockSpec((1, B_blk, L_pad, D_img),
                             lambda i, h: (i, 0, 0, 0)),      # image_feat (resident over h)
                pl.BlockSpec((1, B_blk, H_tile),
                             lambda i, h: (i, 0, h)),         # q_bias tile
                pl.BlockSpec((D_img, H_tile),
                             lambda i, h: (0, h)),            # W1_img tile (streamed)
                pl.BlockSpec((1, H_tile),
                             lambda i, h: (0, h)),            # w2 tile
            ],
            out_specs=pl.BlockSpec((1, B_blk, L_pad),
                                   lambda i, h: (i, 0, 0)),   # accumulator output
            scratch_shapes=[pltpu.VMEM((B_blk, L_pad), jnp.float32)],
        ),
        compiler_params=pltpu.CompilerParams(
            dimension_semantics=("parallel", "arbitrary"),
            vmem_limit_bytes=vmem_limit),
        cost_estimate=cost,
    )(img4, qb3, w1i, w2_row)

    # expand_as(image_feat): lazy broadcast outside the kernel (per-feature
    # copies are redundant; XLA fuses this into the consumer).
    att = att.reshape(B, L_pad)[:, :L]
    return jnp.broadcast_to(att[:, :, None], (B, L, D_img))


def init_params(key, image_feat_dim, txt_dim, hidden_size):
    """Deterministic synthetic parameters matching the module's shapes."""
    k1, k2, k3, k4 = jax.random.split(key, 4)
    # Fa: Linear(D_img + D_txt, H)  -> stored transposed, split into img/txt parts.
    w1 = jax.random.normal(k1, (image_feat_dim + txt_dim, hidden_size),
                           jnp.float32) * 0.05
    w1_img = w1[:image_feat_dim]                      # (D_img, H)
    w1_txt = w1[image_feat_dim:]                      # (D_txt, H)
    b1 = jax.random.normal(k2, (1, hidden_size), jnp.float32) * 0.05
    # lc: Linear(H, 1)
    w2 = jax.random.normal(k3, (hidden_size, 1), jnp.float32) * 0.05
    b2 = jax.random.normal(k4, (1, 1), jnp.float32) * 0.05
    return (w1_img, w1_txt, b1, w2, b2)


def _reference(image_feat, question_embedding, params):
    """Plain-JAX reference of the PyTorch forward, for a sanity check."""
    w1_img, w1_txt, b1, w2, b2 = params
    B, L, _ = image_feat.shape
    q_exp = jnp.broadcast_to(question_embedding[:, None, :],
                             (B, L, question_embedding.shape[-1]))
    concat = jnp.concatenate([image_feat, q_exp], axis=2)
    h = jax.nn.relu(concat @ jnp.concatenate([w1_img, w1_txt], axis=0) + b1)
    raw = h @ w2 + b2                                  # (B, L, 1)
    att = jax.nn.softmax(raw, axis=1)
    return jnp.broadcast_to(att, image_feat.shape)


if __name__ == "__main__":
    # Small shapes: batch=4, num_location=16, image_feat_dim=32,
    # txt_rnn_embeding_dim=32, hidden_size=32.
    B, L, D_img, D_txt, H = 4, 16, 32, 32, 32

    key = jax.random.PRNGKey(0)
    k_img, k_q, k_p = jax.random.split(key, 3)
    image_feat = jax.random.normal(k_img, (B, L, D_img), jnp.float32)
    question_embedding = jax.random.normal(k_q, (B, D_txt), jnp.float32)
    params = init_params(k_p, D_img, D_txt, H)

    ref = _reference(image_feat, question_embedding, params)

    # f32 path: tight check against the PyTorch-equivalent reference.
    out_f32 = concatenate_attention(image_feat, question_embedding, params,
                                    compute_dtype=jnp.float32)
    out_f32 = jax.block_until_ready(out_f32)
    assert out_f32.shape == (B, L, D_img)
    assert jnp.allclose(out_f32, ref, atol=1e-5, rtol=1e-5)

    # bf16 MXU path (production default): looser tolerance by design.
    out_bf16 = concatenate_attention(image_feat, question_embedding, params,
                                     compute_dtype=jnp.bfloat16)
    out_bf16 = jax.block_until_ready(out_bf16)
    assert out_bf16.shape == (B, L, D_img)
    assert jnp.allclose(out_bf16, ref, atol=2e-2, rtol=2e-2)

    print("KERNEL_OK")
</pallas_src>

<mosaic_0001>
module attributes {stable_mosaic.version = 11 : i64} {
  func.func @_attention_kernel(%arg0: i32, %arg1: i32, %arg2: memref<1x4x16x32xf32, #tpu.memory_space<vmem>>, %arg3: memref<1x4x128xf32, #tpu.memory_space<vmem>>, %arg4: memref<32x128xf32, #tpu.memory_space<vmem>>, %arg5: memref<1x128xf32, #tpu.memory_space<vmem>>, %arg6: memref<1x4x16xf32, #tpu.memory_space<vmem>>, %arg7: memref<4x16xf32, #tpu.memory_space<vmem>>) attributes {dimension_semantics = [#tpu.dimension_semantics<parallel>, #tpu.dimension_semantics<arbitrary>], iteration_bounds = array<i64: 1, 1>, scalar_prefetch = 0 : i64, scratch_operands = 1 : i64, tpu.core_type = #tpu.core_type<tc>, window_params = [{transform_indices = @transform_0, window_bounds = array<i64: 1, 4, 16, 32>}, {transform_indices = @transform_1, window_bounds = array<i64: 1, 4, 128>}, {transform_indices = @transform_2, window_bounds = array<i64: 32, 128>}, {transform_indices = @transform_3, window_bounds = array<i64: 1, 128>}, {transform_indices = @transform_4, window_bounds = array<i64: 1, 4, 16>}]} {
    %c0_i32 = arith.constant 0 : i32
    %0 = arith.cmpi eq, %arg1, %c0_i32 : i32
    %1 = arith.extui %0 : i1 to i32
    %c0_i32_0 = arith.constant 0 : i32
    %2 = arith.cmpi ne, %1, %c0_i32_0 : i32
    scf.if %2 {
      %cst_19 = arith.constant 0.000000e+00 : f32
      %25 = vector.broadcast %cst_19 : f32 to vector<4x16xf32>
      %c0_20 = arith.constant 0 : index
      %c0_21 = arith.constant 0 : index
      %26 = vector.load %arg7[%c0_20, %c0_21] : memref<4x16xf32, #tpu.memory_space<vmem>>, vector<4x16xf32>
      tpu.vector_store %arg7[%c0_20, %c0_21], %25 {strides = array<i32>} : memref<4x16xf32, #tpu.memory_space<vmem>>, vector<4x16xf32>,
    } else {
    }
    %c0 = arith.constant 0 : index
    %c0_1 = arith.constant 0 : index
    %c0_2 = arith.constant 0 : index
    %c0_3 = arith.constant 0 : index
    %3 = vector.load %arg2[%c0, %c0_1, %c0_2, %c0_3] : memref<1x4x16x32xf32, #tpu.memory_space<vmem>>, vector<1x4x16x32xf32>
    %4 = vector.shape_cast %3 : vector<1x4x16x32xf32> to vector<4x16x32xf32>
    %c0_4 = arith.constant 0 : index
    %c0_5 = arith.constant 0 : index
    %c0_6 = arith.constant 0 : index
    %5 = vector.load %arg3[%c0_4, %c0_5, %c0_6] : memref<1x4x128xf32, #tpu.memory_space<vmem>>, vector<1x4x128xf32>
    %6 = vector.shape_cast %5 : vector<1x4x128xf32> to vector<4x128xf32>
    %c0_7 = arith.constant 0 : index
    %c0_8 = arith.constant 0 : index
    %7 = vector.load %arg5[%c0_7, %c0_8] : memref<1x128xf32, #tpu.memory_space<vmem>>, vector<1x128xf32>
    %c0_9 = arith.constant 0 : index
    %c0_10 = arith.constant 0 : index
    %8 = vector.load %arg4[%c0_9, %c0_10] : memref<32x128xf32, #tpu.memory_space<vmem>>, vector<32x128xf32>
    %cst = arith.constant dense<0.000000e+00> : vector<4x16x128xf32>
    %9 = tpu.matmul %4, %8, %cst {dimension_numbers = #tpu.dot_dimension_numbers<[2], [0], [0, 1], [1], [0, 0, 0, 1, 1, 1], [], []>} : vector<4x16x32xf32>, vector<32x128xf32>, vector<4x16x128xf32> -> vector<4x16x128xf32>
    %10 = vector.shape_cast %6 : vector<4x128xf32> to vector<4x1x128xf32>
    %11 = vector.broadcast %10 : vector<4x1x128xf32> to vector<4x16x128xf32>
    %12 = arith.addf %9, %11 : vector<4x16x128xf32>
    %cst_11 = arith.constant 0.000000e+00 : f32
    %13 = vector.broadcast %cst_11 : f32 to vector<4x16x128xf32>
    %14 = arith.maximumf %12, %13 : vector<4x16x128xf32>
    %c0_12 = arith.constant 0 : index
    %c0_13 = arith.constant 0 : index
    %15 = vector.load %arg7[%c0_12, %c0_13] : memref<4x16xf32, #tpu.memory_space<vmem>>, vector<4x16xf32>
    %16 = vector.shape_cast %7 : vector<1x128xf32> to vector<1x1x128xf32>
    %17 = vector.broadcast %16 : vector<1x1x128xf32> to vector<4x16x128xf32>
    %18 = arith.mulf %14, %17 : vector<4x16x128xf32>
    %cst_14 = arith.constant dense<0.000000e+00> : vector<4x16xf32>
    %19 = vector.multi_reduction <add>, %18, %cst_14 [2] : vector<4x16x128xf32> to vector<4x16xf32>
    %20 = arith.addf %15, %19 : vector<4x16xf32>
    %c0_15 = arith.constant 0 : index
    %c0_16 = arith.constant 0 : index
    %21 = vector.load %arg7[%c0_15, %c0_16] : memref<4x16xf32, #tpu.memory_space<vmem>>, vector<4x16xf32>
    tpu.vector_store %arg7[%c0_15, %c0_16], %20 {strides = array<i32>} : memref<4x16xf32, #tpu.memory_space<vmem>>, vector<4x16xf32>,
    %c0_i32_17 = arith.constant 0 : i32
    %22 = arith.cmpi eq, %arg1, %c0_i32_17 : i32
    %23 = arith.extui %22 : i1 to i32
    %c0_i32_18 = arith.constant 0 : i32
    %24 = arith.cmpi ne, %23, %c0_i32_18 : i32
    scf.if %24 {
      %c0_19 = arith.constant 0 : index
      %c0_20 = arith.constant 0 : index
      %25 = vector.load %arg7[%c0_19, %c0_20] : memref<4x16xf32, #tpu.memory_space<vmem>>, vector<4x16xf32>
      %cst_21 = arith.constant dense<0xFF800000> : vector<4xf32>
      %26 = vector.multi_reduction <maximumf>, %25, %cst_21 [1] : vector<4x16xf32> to vector<4xf32>
      %27 = vector.shape_cast %26 : vector<4xf32> to vector<4x1xf32>
      %28 = vector.broadcast %27 : vector<4x1xf32> to vector<4x16xf32>
      %29 = arith.subf %25, %28 : vector<4x16xf32>
      %30 = math.exp %29 : vector<4x16xf32>
      %cst_22 = arith.constant dense<0.000000e+00> : vector<4xf32>
      %31 = vector.multi_reduction <add>, %30, %cst_22 [1] : vector<4x16xf32> to vector<4xf32>
      %32 = vector.shape_cast %31 : vector<4xf32> to vector<4x1xf32>
      %33 = vector.broadcast %32 : vector<4x1xf32> to vector<4x16xf32>
      %34 = arith.divf %30, %33 : vector<4x16xf32>
      %c0_23 = arith.constant 0 : index
      %c0_24 = arith.constant 0 : index
      %c0_25 = arith.constant 0 : index
      %35 = vector.load %arg6[%c0_23, %c0_24, %c0_25] : memref<1x4x16xf32, #tpu.memory_space<vmem>>, vector<1x4x16xf32>
      %36 = vector.shape_cast %35 : vector<1x4x16xf32> to vector<4x16xf32>
      %37 = vector.shape_cast %34 : vector<4x16xf32> to vector<1x4x16xf32>
      tpu.vector_store %arg6[%c0_23, %c0_24, %c0_25], %37 {strides = array<i32>} : memref<1x4x16xf32, #tpu.memory_space<vmem>>, vector<1x4x16xf32>,
    } else {
    }
    return
  }
  func.func @transform_0(%arg0: i32, %arg1: i32) -> (i32, i32, i32, i32) {
    %c0_i32 = arith.constant 0 : i32
    %c0_i32_0 = arith.constant 0 : i32
    %c0_i32_1 = arith.constant 0 : i32
    %c0_i32_2 = arith.constant 0 : i32
    return %arg0, %c0_i32, %c0_i32_0, %c0_i32_1 : i32, i32, i32, i32
  }
  func.func @transform_1(%arg0: i32, %arg1: i32) -> (i32, i32, i32) {
    %c0_i32 = arith.constant 0 : i32
    %c0_i32_0 = arith.constant 0 : i32
    return %arg0, %c0_i32, %arg1 : i32, i32, i32
  }
  func.func @transform_2(%arg0: i32, %arg1: i32) -> (i32, i32) {
    %c0_i32 = arith.constant 0 : i32
    %c0_i32_0 = arith.constant 0 : i32
    return %c0_i32, %arg1 : i32, i32
  }
  func.func @transform_3(%arg0: i32, %arg1: i32) -> (i32, i32) {
    %c0_i32 = arith.constant 0 : i32
    %c0_i32_0 = arith.constant 0 : i32
    return %c0_i32, %arg1 : i32, i32
  }
  func.func @transform_4(%arg0: i32, %arg1: i32) -> (i32, i32, i32) {
    %c0_i32 = arith.constant 0 : i32
    %c0_i32_0 = arith.constant 0 : i32
    %c0_i32_1 = arith.constant 0 : i32
    return %arg0, %c0_i32, %c0_i32_0 : i32, i32, i32
  }
}

</mosaic_0001>

<bundles_post_ra>
// kernel: tpu_custom_call.1
= control target key start
LH: loop header
LB: loop body
LE: loop exit
PB: predicated region body
PF: predicated region fallthrough
CT: control target
= control target key end

     0   :  { %9 = vsyncpa [#allocation4], 0  ;;  %s476_s0 = inlined_call_operand.hbm [shape: f32[1,4,16,32], index: 0, kind: input, shape index: {}]   ;;  %s477_s1 = inlined_call_operand.hbm [shape: f32[1,4,128], index: 1, kind: input, shape index: {}]   ;;  %s478_s2 = inlined_call_operand.hbm [shape: f32[32,128], index: 2, kind: input, shape index: {}]   ;;  %s479_s3 = inlined_call_operand.vmem [shape: f32[1,128], index: 3, kind: input, shape index: {}]   ;;  %s480_s4 = inlined_call_operand.hbm [shape: f32[1,4,16], index: 4, kind: output, shape index: {}]  }
   0x1   :  { %10 = vsyncpa [#allocation7], 0  ;;  %s30_s17 = sshll.u32 %s477_s1, 4  ;;  %s31_s17 = int_to_ptr.hbm [resolvable:$true] %s30_s17 }
   0x2   :  { %11 = vsyncpa [#allocation5], 0  ;;  %s412_s18 = smov [#allocation6]   ;;  %s16_s22 = sshll.u32 %s476_s0, 4  ;;  %s17_s22 = int_to_ptr.hbm [resolvable:$true] %s16_s22 }
   0x3   :  { %s32_s19 = sshll.u32 %s412_s18, 4  ;;  %s413_s23 = smov [#allocation3]   ;;  %s33_s19 = int_to_ptr.vmem [resolvable:$true] %s32_s19 }
   0x4   :  { %35 = dma.hbm_to_vmem [thread:$0]  %s31_s17, 64, %s33_s19, [#allocation7]  }
   0x5   :  { %s18_s24 = sshll.u32 %s413_s23, 4  ;;  %s414_s25 = smov 128   ;;  %s19_s24 = int_to_ptr.vmem [resolvable:$true] %s18_s24 }
   0x6   :  { %s415_s26 = smov 8   ;;  %s40_s1 = sshll.u32 %s478_s2, 4  ;;  %s41_s1 = int_to_ptr.hbm [resolvable:$true] %s40_s1 }
   0x7   :  { %24 = dma.hbm_to_vmem [thread:$0]  %s17_s22, 1024, %s19_s24, [#allocation4], %s414_s25, %s414_s25, %s415_s26  }
   0x8   :  { %s416_s29 = smov [#allocation8]  }
   0x9   :  { %s42_s30 = sshll.u32 %s416_s29, 4  ;;  %s43_s30 = int_to_ptr.vmem [resolvable:$true] %s42_s30 }
   0xa   :  { %48 = dma.hbm_to_vmem [thread:$0]  %s41_s1, 512, %s43_s30, [#allocation7], %s414_s25, %s414_s25, %s415_s26  }
   0xb   :  { %406 = dma.done.wait [#allocation4], 1024  }
   0xc   :  { %407 = vsyncadd [#allocation4], 4294966272 }
   0xd   :  { %408 = dma.done.wait [#allocation7], 576  }
   0xe   :  { %409 = vsyncadd [#allocation7], 4294966720  ;;  %v82_v0 = vld [vmem:[#allocation8 + $0x18] sm:$0xff]  ;;  %v81_v1 = vld [vmem:[#allocation8 + $0x10] sm:$0xff]  ;;  %vm95_vm0 = vcmask 261120   ;;  %vm67_vm1 = vcmask 125952   ;;  %v205_v55 = vlaneseq }
   0xf   :  { %132 = vmatpush.msra.mxu0 %v82_v0  ;;  %286 = vmatpush.msra.mxu1 %v82_v0  ;;  %v80_v2 = vld [vmem:[#allocation8 + $0x8] sm:$0xff]  ;;  %v79_v3 = vld [vmem:[#allocation8] sm:$0xff]  ;;  %v72_v9 = vld [vmem:[#allocation3 + $0x18] sm:$0xff]  ;;  %v417_v53 = vmov 0.0   ;;  %vm210_vm2 = vcmask 130112   ;;  %vm221_vm3 = vcmask 1041409  }
  0x10   :  { %287 = vmatpush.msra.mxu2 %v82_v0  ;;  %288 = vmatpush.msra.mxu3 %v82_v0  ;;  %v69_v4 = vld [vmem:[#allocation3] sm:$0xff]  ;;  %v71_v5 = vld [vmem:[#allocation3 + $0x10] sm:$0xff]  ;;  %v70_v8 = vld [vmem:[#allocation3 + $0x8] sm:$0xff]  ;;  %68 = vst.msk [vmem:[#allocation2] sm:$0xf] %vm67_vm1, %v417_v53  ;;  %v206_v57 = vand.u32 127, %v205_v55 }
  0x11   :  { %133 = vmatpush.msra.mxu0 %v81_v1  ;;  %289 = vmatpush.msra.mxu1 %v81_v1  ;;  %v73_v6 = vld [vmem:[#allocation3 + $0x20] sm:$0xff]  ;;  %v75_v7 = vld [vmem:[#allocation3 + $0x30] sm:$0xff]  ;;  %v74_v10 = vld [vmem:[#allocation3 + $0x28] sm:$0xff]  ;;  %vm223_vm4 = vcmask 1042434   ;;  %vm225_vm5 = vcmask 1043459   ;;  %s267_s8 = sshll.u32 %s480_s4, 4  ;;  %s268_s8 = int_to_ptr.hbm [resolvable:$true] %s267_s8 }
  0x12   :  { %290 = vmatpush.msra.mxu2 %v81_v1  ;;  %291 = vmatpush.msra.mxu3 %v81_v1  ;;  %v76_v11 = vld [vmem:[#allocation3 + $0x38] sm:$0xff]  ;;  %v77_v12 = vld [vmem:[#allocation6] sm:$0xf]  ;;  %v208_v59 = vadd.s32 4294967288, %v206_v57 }
  0x13   :  { %134 = vmatpush.msra.mxu0 %v80_v2  ;;  %292 = vmatpush.msra.mxu1 %v80_v2  ;;  %v84_v13 = vrot.slane %v77_v12, 1  ;;  %v87_v14 = vperm.slane %v77_v12, 0  ;;  %v85_v17 = vrot.slane %v77_v12, 2  ;;  %v305_v20 = vld [vmem:[%s479_s3] ss:$0 sm:$0xff]  ;;  %v86_v26 = vrot.slane %v77_v12, 3 }
  0x14   :  { %293 = vmatpush.msra.mxu2 %v80_v2  ;;  %294 = vmatpush.msra.mxu3 %v80_v2  ;;  %s418_s3 = smov [#allocation9]  }
  0x15   :  { %135 = vmatpush.msra.mxu0 %v79_v3  ;;  %295 = vmatpush.msra.mxu1 %v79_v3  ;;  %v88_v15 = vperm.slane %v84_v13, 0  ;;  %v89_v24 = vperm.slane %v85_v17, 0  ;;  %v90_v33 = vperm.slane %v86_v26, 0  ;;  %s265_s5 = sshll.u32 %s418_s3, 4  ;;  %s266_s5 = int_to_ptr.vmem [resolvable:$true] %s265_s5 }
  0x16   :  { %296 = vmatpush.msra.mxu2 %v79_v3  ;;  %278 = vmatmul.msk.f32.vlgmr.msra.gmra.mxu0 %vm95_vm0, %v69_v4 }
  0x17   :  { %280 = vmatmul.msk.f32.vlgmr.msra.gmra.mxu1 %vm95_vm0, %v71_v5  ;;  %282 = vmatmul.msk.f32.vlgmr.msra.gmra.mxu2 %vm95_vm0, %v73_v6 }
  0x18   :  { %297 = vmatpush.msra.mxu3 %v79_v3 }
  0x19   :  { %284 = vmatmul.msk.f32.vlgmr.msra.gmra.mxu3 %vm95_vm0, %v75_v7 }
  0x1e   :  { %279 = vmatmul.msk.f32.gmra.mxu0 %vm95_vm0, %v70_v8 }
  0x1f   :  { %281 = vmatmul.msk.f32.gmra.mxu1 %vm95_vm0, %v72_v9  ;;  %283 = vmatmul.msk.f32.gmra.mxu2 %vm95_vm0, %v74_v10 }
  0x21   :  { %285 = vmatmul.msk.f32.gmra.mxu3 %vm95_vm0, %v76_v11 }
  0x93   :  { %v137_v16 = vpop.f32.mrf.mxu0 }
  0x94   :  { %v138_v18 = vadd.f32 %v137_v16, %v87_v14  ;;  %v143_v19 = vpop.f32.mrf.mxu1 }
  0x95   :  { %v144_v21 = vadd.f32 %v143_v19, %v88_v15 }
  0x96   :  { %v161_v22 = vmax.f32 %v138_v18, 0.0 }
  0x97   :  { %v163_v23 = vmax.f32 %v144_v21, 0.0 }
  0x98   :  { %v173_v25 = vmul.f32 %v305_v20, %v161_v22 }
  0x99   :  { %v175_v27 = vmul.f32 %v305_v20, %v163_v23 }
  0x9a   :  { %v149_v28 = vpop.f32.mrf.mxu2  ;;  %181 = vadd.xlane.f32.xlu0 %v173_v25 }
  0x9b   :  { %v150_v29 = vadd.f32 %v149_v28, %v89_v24  ;;  %185 = vadd.xlane.f32.xlu1 %v175_v27  ;;  %v140_v30 = vpop.f32.mrf.mxu0 }
  0x9c   :  { %v141_v31 = vadd.f32 %v140_v30, %v87_v14  ;;  %v146_v32 = vpop.f32.mrf.mxu1  ;;  %v155_v34 = vpop.f32.mrf.mxu3  ;;  %v169_v14 = vld [vmem:[#allocation2] sm:$0xf] }
  0x9d   :  { %v165_v35 = vmax.f32 %v150_v29, 0.0  ;;  %v147_v36 = vadd.f32 %v146_v32, %v88_v15  ;;  %v156_v40 = vadd.f32 %v155_v34, %v90_v33 }
  0x9e   :  { %v162_v37 = vmax.f32 %v141_v31, 0.0 }
  0x9f   :  { %v164_v38 = vmax.f32 %v147_v36, 0.0  ;;  %v177_v39 = vmul.f32 %v305_v20, %v165_v35  ;;  %v167_v45 = vmax.f32 %v156_v40, 0.0 }
  0xa0   :  { %v174_v41 = vmul.f32 %v305_v20, %v162_v37 }
  0xa1   :  { %189 = vadd.xlane.f32.xlu2 %v177_v39  ;;  %v176_v42 = vmul.f32 %v305_v20, %v164_v38  ;;  %v179_v51 = vmul.f32 %v305_v20, %v167_v45 }
  0xa2   :  { %v152_v43 = vpop.f32.mrf.mxu2  ;;  %183 = vadd.xlane.f32.xlu0 %v174_v41 }
  0xa3   :  { %v153_v44 = vadd.f32 %v152_v43, %v89_v24  ;;  %187 = vadd.xlane.f32.xlu1 %v176_v42 }
  0xa4   :  { %v158_v46 = vpop.f32.mrf.mxu3 }
  0xa5   :  { %v166_v47 = vmax.f32 %v153_v44, 0.0  ;;  %v159_v48 = vadd.f32 %v158_v46, %v90_v33 }
  0xa7   :  { %v168_v49 = vmax.f32 %v159_v48, 0.0  ;;  %v178_v50 = vmul.f32 %v305_v20, %v166_v47 }
  0xa9   :  { %191 = vadd.xlane.f32.xlu2 %v178_v50  ;;  %v180_v52 = vmul.f32 %v305_v20, %v168_v49 }
  0xaa   :  { %193 = vadd.xlane.f32.xlu0 %v179_v51 }
  0xab   :  { %195 = vadd.xlane.f32.xlu1 %v180_v52 }
 0x10d   :  { %v182_v54 = vpop.xlane.xlu0 %181 }
 0x10e   :  { %v186_v56 = vpop.xlane.xlu1 %185  ;;  %v207_v1 = vperm.slane %v182_v54, %v206_v57 }
 0x10f   :  { %v212_v0 = vperm.slane %v186_v56, %v206_v57 }
 0x114   :  { %v190_v58 = vpop.xlane.xlu2 %189 }
 0x115   :  { %v184_v60 = vpop.xlane.xlu0 %183  ;;  %v215_v5 = vperm.slane %v190_v58, %v206_v57 }
 0x116   :  { %v188_v61 = vpop.xlane.xlu1 %187  ;;  %v209_v63 = vperm.slane %v184_v60, %v208_v59 }
 0x117   :  { %v213_v62 = vperm.slane %v188_v61, %v208_v59 }
 0x118   :  { %v211_v3 = vsel %vm210_vm2, %v209_v63, %v207_v1 }
 0x119   :  { %v214_v2 = vsel %vm210_vm2, %v213_v62, %v212_v0 }
 0x11a   :  { %v222_v10 = vsel %vm221_vm3, %v214_v2, %v211_v3 }
 0x11c   :  { %v192_v4 = vpop.xlane.xlu2 %191 }
 0x11d   :  { %v216_v6 = vperm.slane %v192_v4, %v208_v59  ;;  %v194_v7 = vpop.xlane.xlu0 %193 }
 0x11e   :  { %v196_v8 = vpop.xlane.xlu1 %195  ;;  %v218_v9 = vperm.slane %v194_v7, %v206_v57 }
 0x11f   :  { %v217_v11 = vsel %vm210_vm2, %v216_v6, %v215_v5  ;;  %v219_v12 = vperm.slane %v196_v8, %v208_v59 }
 0x120   :  { %v224_v13 = vsel %vm223_vm4, %v217_v11, %v222_v10 }
 0x121   :  { %v220_v15 = vsel %vm210_vm2, %v219_v12, %v218_v9 }
 0x122   :  { %v226_v16 = vsel %vm225_vm5, %v220_v15, %v224_v13 }
 0x123   :  { %v228_v17 = vadd.f32 %v226_v16, %v169_v14 }
 0x125   :  { %230 = vst.msk [vmem:[#allocation2] sm:$0xf] %vm67_vm1, %v228_v17 }
 0x12c   :  { %v234_v18 = vld [vmem:[#allocation2] sm:$0xf] }
 0x12d   :  { %v235_v19 = vsel %vm67_vm1, %v234_v18, -inf }
 0x12e   :  { %236 = vmax.xlane.f32.xlu2 %v235_v19 }
 0x1a1   :  { %v237_v20 = vpop.xlane.xlu2 %236 }
 0x1a2   :  { %v238_v21 = vsub.f32 %v234_v18, %v237_v20 }
 0x1a4   :  { %v239_v22 = vmul.f32 1.442695, %v238_v21 }
 0x1a6   :  { %306 = vpow2.f32 %v239_v22 }
 0x1ac   :  { %v307_v23 = vpop.eup %306 }
 0x1ad   :  { %v241_v24 = vsel %vm67_vm1, %v307_v23, 0.0 }
 0x1ae   :  { %242 = vadd.xlane.f32.xlu0 %v241_v24 }
 0x221   :  { %v243_v25 = vpop.xlane.xlu0 %242 }
 0x222   :  { %308 = vrcp.f32 %v243_v25  ;;  %v255_v29 = vand.u32 2147483648, %v243_v25  ;;  %v253_v31 = vand.u32 2147483647, %v243_v25  ;;  %vm249_vm7 = vweird.f32 %v243_v25 }
 0x224   :  { %v256_v33 = vor.u32 1.1754944e-38, %v255_v29  ;;  %vm254_vm9 = vcmp.eq.f32.partialorder %v253_v31, 8.507059e+37 }
 0x228   :  { %v309_v26 = vpop.eup %308 }
 0x229   :  { %v245_v27 = vmul.f32 %v309_v26, %v243_v25  ;;  %vm250_vm6 = vweird.f32 %v309_v26 }
 0x22a   :  { %vm251_vm8 = vmor %vm249_vm7, %vm250_vm6 }
 0x22b   :  { %v246_v28 = vsub.f32 1.0, %v245_v27 }
 0x22d   :  { %v247_v30 = vmul.f32 %v309_v26, %v246_v28 }
 0x22f   :  { %v248_v32 = vadd.f32 %v309_v26, %v247_v30 }
 0x231   :  { %v252_v34 = vsel %vm251_vm8, %v309_v26, %v248_v32 }
 0x232   :  { %v257_v35 = vsel %vm254_vm9, %v256_v33, %v252_v34 }
 0x233   :  { %v258_v36 = vmul.f32 %v307_v23, %v257_v35 }
 0x235   :  { %259 = vst.msk [vmem:[#allocation9] sm:$0xf] %vm67_vm1, %v258_v36 }
 0x236   :  { %270 = dma.vmem_to_hbm [thread:$0]  %s266_s5, 64, %s268_s8, [#allocation5]  }
 0x237   :  { %410 = dma.done.wait [#allocation5], 64  }
 0x238   :  { %411 = vsyncadd [#allocation5], 4294967232 }
 0x239   :  { %275 = vsyncpa [#allocation4], 1 }
 0x23a   :  { %276 = vsyncpa [#allocation7], 1 }
 0x23b   :  { %277 = vsyncpa [#allocation5], 1 }

</bundles_post_ra>
